<compile_context>
chip_gen: v5e
topology: v5e:2x2
jax: 0.10.0
libtpu: 0.0.40
codegen_flags: <defaults>
</compile_context>

<pallas_src>
import functools

import jax
import jax.numpy as jnp
from jax.experimental import pallas as pl
from jax.experimental.pallas import tpu as pltpu


def _round_up(x: int, m: int) -> int:
    return (x + m - 1) // m * m


def _sisdr_sums_kernel(clean_ref, est_ref, ec_ref, cc_ref, ee_ref, *,
                       t_total, tile_t, tiles_per_split, need_mask):
    """Accumulates per-row partial sums <e,c>, <c,c>, <e,e> over the time axis.

    grid = (split, batch_block, time_tile); the time-tile axis (last, "arbitrary")
    is the reduction; outputs are resident accumulators indexed by (split, batch).
    """
    k = pl.program_id(2)

    @pl.when(k == 0)
    def _init():
        ec_ref[...] = jnp.zeros_like(ec_ref)
        cc_ref[...] = jnp.zeros_like(cc_ref)
        ee_ref[...] = jnp.zeros_like(ee_ref)

    # Upcast per tile (supports bf16 inputs; no-op for f32). Required on v5e
    # (no bf16 VALU), harmless elsewhere.
    c = clean_ref[...].astype(jnp.float32)   # (block_b, tile_t)
    e = est_ref[...].astype(jnp.float32)

    if need_mask:
        # Global column index of every lane in this tile; anything >= T is
        # either the ragged tail of the signal or Pallas remainder-block /
        # split-overrun padding (unspecified data) and must contribute zero.
        g = pl.program_id(0) * tiles_per_split + k       # global time-tile index
        col = g * tile_t + jax.lax.broadcasted_iota(jnp.int32, c.shape, 1)
        keep = col < t_total
        c = jnp.where(keep, c, 0.0)
        e = jnp.where(keep, e, 0.0)

    # Three per-row running sums: VPU multiplies + (mostly-VALU) lane reduction.
    ec_ref[...] += jnp.sum(e * c, axis=-1, keepdims=True)[None]
    cc_ref[...] += jnp.sum(c * c, axis=-1, keepdims=True)[None]
    ee_ref[...] += jnp.sum(e * e, axis=-1, keepdims=True)[None]


@functools.partial(jax.jit, static_argnames=("block_t",))
def sisdr_loss(clean: jax.Array, est: jax.Array, *, block_t: int | None = None) -> jax.Array:
    """clean, est: (B, T[, ...]) float32/bfloat16. Returns scalar -mean(SI-SDR)."""
    assert clean.shape == est.shape and clean.ndim >= 2
    B = clean.shape[0]
    if clean.ndim > 2:           # per-sample SI-SDR over all trailing dims
        clean = clean.reshape(B, -1)
        est = est.reshape(B, -1)
    T = clean.shape[1]
    itemsize = jnp.dtype(clean.dtype).itemsize

    # Batch tile: multiple of 8 sublanes (and of the bf16 packing of 16 when
    # B > 32), or the full batch for small B.
    block_b = B if B <= 32 else 32
    n_bb = pl.cdiv(B, block_b)

    # Time tile: lane dim multiple of 128, sized so each input streams ~4 MiB
    # of HBM per grid step (well past the pipelining knee on v5e/v6e, sized for
    # v7x's 3.2 TB/s).  Double-buffered footprint: 2 inputs x 2 bufs x 4 MiB
    # = ~16 MiB, which needs the scoped VMEM limit raised above v5e's 16 MiB
    # default (set to 32 MiB below; fits every generation's physical VMEM).
    target_bytes_per_input = 4 * 1024 * 1024
    tt = _round_up(max(target_bytes_per_input // (block_b * itemsize), 128), 128)
    if block_t is not None:
        tt = min(tt, _round_up(block_t, 128))
    tt = min(tt, _round_up(T, 128))

    kt = pl.cdiv(T, tt)                       # true number of time tiles
    # If the batch axis gives only one parallel block, split the time range in
    # two along a leading parallel axis so both v7x TensorCores get work
    # (partial sums are combined in the wrapper). Harmless on v5e/v6e.
    n_splits = 2 if (n_bb == 1 and kt >= 2) else 1
    kps = pl.cdiv(kt, n_splits)               # time tiles per split
    # Mask needed whenever the covered columns (n_splits*kps*tt) != T.
    need_mask = (n_splits * kps * tt != T)

    if n_splits * kps == kt:
        def t_idx(s, k):
            return s * kps + k
    else:
        # Split overrun: clamp the block index (the kernel mask zeroes the
        # duplicated tile's contribution).
        def t_idx(s, k):
            return jnp.minimum(s * kps + k, kt - 1)

    in_spec = pl.BlockSpec((block_b, tt), lambda s, b, k: (b, t_idx(s, k)))
    out_spec = pl.BlockSpec((1, block_b, 1), lambda s, b, k: (s, b, 0))
    out_sds = jax.ShapeDtypeStruct((n_splits, B, 1), jnp.float32)

    kernel = functools.partial(
        _sisdr_sums_kernel,
        t_total=T, tile_t=tt, tiles_per_split=kps, need_mask=need_mask)

    ec_p, cc_p, ee_p = pl.pallas_call(
        kernel,
        out_shape=(out_sds, out_sds, out_sds),
        grid_spec=pltpu.PrefetchScalarGridSpec(
            num_scalar_prefetch=0,
            grid=(n_splits, n_bb, kps),
            in_specs=[in_spec, in_spec],
            out_specs=(out_spec, out_spec, out_spec),
        ),
        compiler_params=pltpu.CompilerParams(
            dimension_semantics=("parallel", "parallel", "arbitrary"),
            vmem_limit_bytes=32 * 1024 * 1024,
        ),
    )(clean, est)

    # Tiny epilogue (one fused XLA op): combine split partials and finish.
    ec = jnp.sum(ec_p, axis=0)[:, 0]          # (B,)
    cc = jnp.sum(cc_p, axis=0)[:, 0]
    ee = jnp.sum(ee_p, axis=0)[:, 0]
    num = ec * ec
    cross = cc * ee
    # Guard catastrophic cancellation for near-perfect reconstructions
    # (caps SI-SDR near ~120 dB instead of -inf/NaN from log10).
    den = jnp.maximum(cross - num, jnp.float32(1e-12) * cross)
    si_sdr = 10.0 * (jnp.log10(num) - jnp.log10(den))
    return -jnp.mean(si_sdr)


def _sisdr_ref(clean: jax.Array, est: jax.Array) -> jax.Array:
    # Pure-JAX reference mirroring the per-sample torch loop (two-pass form).
    clean = clean.reshape(clean.shape[0], -1).astype(jnp.float32)
    est = est.reshape(est.shape[0], -1).astype(jnp.float32)

    def one(c, e):
        alpha = jnp.dot(e, c) / jnp.sum(c * c)
        target = alpha * c
        noise = target - e
        return 10.0 * jnp.log10(jnp.sum(target * target) / jnp.sum(noise * noise))

    return -jnp.mean(jax.vmap(one)(clean, est))


if __name__ == "__main__":
    # TODO(synk): the optional `transform` callable from the module __init__ is
    # identity here (SISDR itself has no learnable parameters).
    key = jax.random.PRNGKey(0)

    def make_inputs(b, t, k, dtype=jnp.float32):
        k1, k2 = jax.random.split(k)
        clean = jax.random.normal(k1, (b, t), dtype=jnp.float32)
        # Estimated signal = noisy clean so SI-SDR is finite/meaningful (~20 dB).
        est = clean + 0.1 * jax.random.normal(k2, (b, t), dtype=jnp.float32)
        return clean.astype(dtype), est.astype(dtype)

    cases = [
        ((2, 800), None, jnp.float32),    # single ragged tile -> in-kernel mask
        ((4, 1000), 256, jnp.float32),    # multi-tile reduction + 2-way time split + mask
        ((16, 2048), 512, jnp.bfloat16),  # bf16 inputs, exact tiling, time split
        ((40, 1024), 512, jnp.float32),   # batch remainder block (40 = 32 + 8)
    ]
    keys = jax.random.split(key, len(cases))
    for ((b, t), bt, dt), kk in zip(cases, keys):
        clean, est = make_inputs(b, t, kk, dt)
        loss = sisdr_loss(clean, est, block_t=bt)
        jax.block_until_ready(loss)
        ref = _sisdr_ref(clean, est)
        atol = 1e-3 if dt == jnp.float32 else 1e-2
        assert jnp.allclose(loss, ref, rtol=1e-3, atol=atol), ((b, t), dt, loss, ref)

    print("KERNEL_OK")
</pallas_src>

<mosaic_0001>
module attributes {stable_mosaic.version = 11 : i64} {
  func.func @_sisdr_sums_kernel(%arg0: i32, %arg1: i32, %arg2: i32, %arg3: memref<2x896xf32, #tpu.memory_space<vmem>>, %arg4: memref<2x896xf32, #tpu.memory_space<vmem>>, %arg5: memref<1x2x1xf32, #tpu.memory_space<vmem>>, %arg6: memref<1x2x1xf32, #tpu.memory_space<vmem>>, %arg7: memref<1x2x1xf32, #tpu.memory_space<vmem>>) attributes {dimension_semantics = [#tpu.dimension_semantics<parallel>, #tpu.dimension_semantics<parallel>, #tpu.dimension_semantics<arbitrary>], iteration_bounds = array<i64: 1, 1, 1>, scalar_prefetch = 0 : i64, scratch_operands = 0 : i64, tpu.core_type = #tpu.core_type<tc>, window_params = [{transform_indices = @transform_0, window_bounds = array<i64: 2, 896>}, {transform_indices = @transform_1, window_bounds = array<i64: 2, 896>}, {transform_indices = @transform_2, window_bounds = array<i64: 1, 2, 1>}, {transform_indices = @transform_3, window_bounds = array<i64: 1, 2, 1>}, {transform_indices = @transform_4, window_bounds = array<i64: 1, 2, 1>}]} {
    %c0_i32 = arith.constant 0 : i32
    %0 = arith.cmpi eq, %arg2, %c0_i32 : i32
    %1 = arith.extui %0 : i1 to i32
    %c0_i32_0 = arith.constant 0 : i32
    %2 = arith.cmpi ne, %1, %c0_i32_0 : i32
    scf.if %2 {
      %cst_26 = arith.constant 0.000000e+00 : f32
      %38 = vector.broadcast %cst_26 : f32 to vector<1x2x1xf32>
      %c0_27 = arith.constant 0 : index
      %c0_28 = arith.constant 0 : index
      %c0_29 = arith.constant 0 : index
      %39 = vector.load %arg5[%c0_27, %c0_28, %c0_29] : memref<1x2x1xf32, #tpu.memory_space<vmem>>, vector<1x2x1xf32>
      tpu.vector_store %arg5[%c0_27, %c0_28, %c0_29], %38 {strides = array<i32>} : memref<1x2x1xf32, #tpu.memory_space<vmem>>, vector<1x2x1xf32>,
      %cst_30 = arith.constant 0.000000e+00 : f32
      %40 = vector.broadcast %cst_30 : f32 to vector<1x2x1xf32>
      %c0_31 = arith.constant 0 : index
      %c0_32 = arith.constant 0 : index
      %c0_33 = arith.constant 0 : index
      %41 = vector.load %arg6[%c0_31, %c0_32, %c0_33] : memref<1x2x1xf32, #tpu.memory_space<vmem>>, vector<1x2x1xf32>
      tpu.vector_store %arg6[%c0_31, %c0_32, %c0_33], %40 {strides = array<i32>} : memref<1x2x1xf32, #tpu.memory_space<vmem>>, vector<1x2x1xf32>,
      %cst_34 = arith.constant 0.000000e+00 : f32
      %42 = vector.broadcast %cst_34 : f32 to vector<1x2x1xf32>
      %c0_35 = arith.constant 0 : index
      %c0_36 = arith.constant 0 : index
      %c0_37 = arith.constant 0 : index
      %43 = vector.load %arg7[%c0_35, %c0_36, %c0_37] : memref<1x2x1xf32, #tpu.memory_space<vmem>>, vector<1x2x1xf32>
      tpu.vector_store %arg7[%c0_35, %c0_36, %c0_37], %42 {strides = array<i32>} : memref<1x2x1xf32, #tpu.memory_space<vmem>>, vector<1x2x1xf32>,
    } else {
    }
    %c0 = arith.constant 0 : index
    %c0_1 = arith.constant 0 : index
    %3 = vector.load %arg3[%c0, %c0_1] : memref<2x896xf32, #tpu.memory_space<vmem>>, vector<2x896xf32>
    %c0_2 = arith.constant 0 : index
    %c0_3 = arith.constant 0 : index
    %4 = vector.load %arg4[%c0_2, %c0_3] : memref<2x896xf32, #tpu.memory_space<vmem>>, vector<2x896xf32>
    %c1_i32 = arith.constant 1 : i32
    %5 = arith.muli %arg0, %c1_i32 : i32
    %6 = arith.addi %5, %arg2 : i32
    %c896_i32 = arith.constant 896 : i32
    %7 = arith.muli %6, %c896_i32 : i32
    %8 = tpu.iota {dimensions = array<i32: 1>} : vector<2x896xi32>
    %9 = vector.broadcast %7 : i32 to vector<2x896xi32>
    %10 = arith.addi %9, %8 : vector<2x896xi32>
    %c800_i32 = arith.constant 800 : i32
    %11 = vector.broadcast %c800_i32 : i32 to vector<2x896xi32>
    %12 = arith.cmpi slt, %10, %11 : vector<2x896xi32>
    %cst = arith.constant 0.000000e+00 : f32
    %13 = vector.broadcast %cst : f32 to vector<2x896xf32>
    %14 = arith.select %12, %3, %13 : vector<2x896xi1>, vector<2x896xf32>
    %cst_4 = arith.constant 0.000000e+00 : f32
    %15 = vector.broadcast %cst_4 : f32 to vector<2x896xf32>
    %16 = arith.select %12, %4, %15 : vector<2x896xi1>, vector<2x896xf32>
    %c0_5 = arith.constant 0 : index
    %c0_6 = arith.constant 0 : index
    %c0_7 = arith.constant 0 : index
    %17 = vector.load %arg5[%c0_5, %c0_6, %c0_7] : memref<1x2x1xf32, #tpu.memory_space<vmem>>, vector<1x2x1xf32>
    %18 = arith.mulf %16, %14 : vector<2x896xf32>
    %cst_8 = arith.constant dense<0.000000e+00> : vector<2xf32>
    %19 = vector.multi_reduction <add>, %18, %cst_8 [1] : vector<2x896xf32> to vector<2xf32>
    %20 = vector.shape_cast %19 : vector<2xf32> to vector<2x1xf32>
    %21 = vector.shape_cast %20 : vector<2x1xf32> to vector<1x2x1xf32>
    %22 = arith.addf %17, %21 : vector<1x2x1xf32>
    %c0_9 = arith.constant 0 : index
    %c0_10 = arith.constant 0 : index
    %c0_11 = arith.constant 0 : index
    %23 = vector.load %arg5[%c0_9, %c0_10, %c0_11] : memref<1x2x1xf32, #tpu.memory_space<vmem>>, vector<1x2x1xf32>
    tpu.vector_store %arg5[%c0_9, %c0_10, %c0_11], %22 {strides = array<i32>} : memref<1x2x1xf32, #tpu.memory_space<vmem>>, vector<1x2x1xf32>,
    %c0_12 = arith.constant 0 : index
    %c0_13 = arith.constant 0 : index
    %c0_14 = arith.constant 0 : index
    %24 = vector.load %arg6[%c0_12, %c0_13, %c0_14] : memref<1x2x1xf32, #tpu.memory_space<vmem>>, vector<1x2x1xf32>
    %25 = arith.mulf %14, %14 : vector<2x896xf32>
    %cst_15 = arith.constant dense<0.000000e+00> : vector<2xf32>
    %26 = vector.multi_reduction <add>, %25, %cst_15 [1] : vector<2x896xf32> to vector<2xf32>
    %27 = vector.shape_cast %26 : vector<2xf32> to vector<2x1xf32>
    %28 = vector.shape_cast %27 : vector<2x1xf32> to vector<1x2x1xf32>
    %29 = arith.addf %24, %28 : vector<1x2x1xf32>
    %c0_16 = arith.constant 0 : index
    %c0_17 = arith.constant 0 : index
    %c0_18 = arith.constant 0 : index
    %30 = vector.load %arg6[%c0_16, %c0_17, %c0_18] : memref<1x2x1xf32, #tpu.memory_space<vmem>>, vector<1x2x1xf32>
    tpu.vector_store %arg6[%c0_16, %c0_17, %c0_18], %29 {strides = array<i32>} : memref<1x2x1xf32, #tpu.memory_space<vmem>>, vector<1x2x1xf32>,
    %c0_19 = arith.constant 0 : index
    %c0_20 = arith.constant 0 : index
    %c0_21 = arith.constant 0 : index
    %31 = vector.load %arg7[%c0_19, %c0_20, %c0_21] : memref<1x2x1xf32, #tpu.memory_space<vmem>>, vector<1x2x1xf32>
    %32 = arith.mulf %16, %16 : vector<2x896xf32>
    %cst_22 = arith.constant dense<0.000000e+00> : vector<2xf32>
    %33 = vector.multi_reduction <add>, %32, %cst_22 [1] : vector<2x896xf32> to vector<2xf32>
    %34 = vector.shape_cast %33 : vector<2xf32> to vector<2x1xf32>
    %35 = vector.shape_cast %34 : vector<2x1xf32> to vector<1x2x1xf32>
    %36 = arith.addf %31, %35 : vector<1x2x1xf32>
    %c0_23 = arith.constant 0 : index
    %c0_24 = arith.constant 0 : index
    %c0_25 = arith.constant 0 : index
    %37 = vector.load %arg7[%c0_23, %c0_24, %c0_25] : memref<1x2x1xf32, #tpu.memory_space<vmem>>, vector<1x2x1xf32>
    tpu.vector_store %arg7[%c0_23, %c0_24, %c0_25], %36 {strides = array<i32>} : memref<1x2x1xf32, #tpu.memory_space<vmem>>, vector<1x2x1xf32>,
    return
  }
  func.func @transform_0(%arg0: i32, %arg1: i32, %arg2: i32) -> (i32, i32) {
    %c1_i32 = arith.constant 1 : i32
    %0 = arith.muli %arg0, %c1_i32 : i32
    %1 = arith.addi %0, %arg2 : i32
    %c0_i32 = arith.constant 0 : i32
    return %arg1, %1 : i32, i32
  }
  func.func @transform_1(%arg0: i32, %arg1: i32, %arg2: i32) -> (i32, i32) {
    %c1_i32 = arith.constant 1 : i32
    %0 = arith.muli %arg0, %c1_i32 : i32
    %1 = arith.addi %0, %arg2 : i32
    %c0_i32 = arith.constant 0 : i32
    return %arg1, %1 : i32, i32
  }
  func.func @transform_2(%arg0: i32, %arg1: i32, %arg2: i32) -> (i32, i32, i32) {
    %c0_i32 = arith.constant 0 : i32
    %c0_i32_0 = arith.constant 0 : i32
    return %arg0, %arg1, %c0_i32 : i32, i32, i32
  }
  func.func @transform_3(%arg0: i32, %arg1: i32, %arg2: i32) -> (i32, i32, i32) {
    %c0_i32 = arith.constant 0 : i32
    %c0_i32_0 = arith.constant 0 : i32
    return %arg0, %arg1, %c0_i32 : i32, i32, i32
  }
  func.func @transform_4(%arg0: i32, %arg1: i32, %arg2: i32) -> (i32, i32, i32) {
    %c0_i32 = arith.constant 0 : i32
    %c0_i32_0 = arith.constant 0 : i32
    return %arg0, %arg1, %c0_i32 : i32, i32, i32
  }
}

</mosaic_0001>

<bundles_post_ra>
// kernel: sisdr_loss.1
= control target key start
LH: loop header
LB: loop body
LE: loop exit
PB: predicated region body
PF: predicated region fallthrough
CT: control target
= control target key end

     0   :  { %10 = vsyncpa [#allocation3], 0  ;;  %s379_s0 = inlined_call_operand.hbm [shape: f32[2,800], index: 0, kind: input, shape index: {}]   ;;  %s380_s1 = inlined_call_operand.hbm [shape: f32[2,800], index: 1, kind: input, shape index: {}]   ;;  %s381_s2 = inlined_call_operand.vmem [shape: f32[1,2,1], index: 2, kind: output, shape index: {0}]   ;;  %s382_s3 = inlined_call_operand.vmem [shape: f32[1,2,1], index: 3, kind: output, shape index: {1}]   ;;  %s383_s4 = inlined_call_operand.vmem [shape: f32[1,2,1], index: 4, kind: output, shape index: {2}]  }
   0x1   :  { %s21_s17 = sshll.u32 %s379_s0, 4  ;;  %s22_s17 = int_to_ptr.hbm [resolvable:$true] %s21_s17 }
   0x2   :  { %11 = vsyncpa [#allocation5], 0  ;;  %s289_s18 = smov [#allocation2]   ;;  %s36_s22 = sshll.u32 %s380_s1, 4  ;;  %s37_s22 = int_to_ptr.hbm [resolvable:$true] %s36_s22 }
   0x3   :  { %s23_s19 = sshll.u32 %s289_s18, 4  ;;  %s290_s23 = smov [#allocation4]   ;;  %s24_s19 = int_to_ptr.vmem [resolvable:$true] %s23_s19 }
   0x4   :  { %26 = dma.hbm_to_vmem [thread:$0]  %s22_s17, 224, %s24_s19, [#allocation3]  }
   0x5   :  { %s38_s24 = sshll.u32 %s290_s23, 4  ;;  %s39_s24 = int_to_ptr.vmem [resolvable:$true] %s38_s24 }
   0x6   :  { %41 = dma.hbm_to_vmem [thread:$0]  %s37_s22, 224, %s39_s24, [#allocation5]  }
   0x7   :  { %285 = dma.done.wait [#allocation3], 224  }
   0x8   :  { %286 = vsyncadd [#allocation3], 4294967072 }
   0x9   :  { %287 = dma.done.wait [#allocation5], 224  }
   0xa   :  { %288 = vsyncadd [#allocation5], 4294967072  ;;  %v68_v0 = vlaneseq  ;;  %v62_v1 = vld [vmem:[#allocation2] sm:$0xff]  ;;  %v63_v2 = vld [vmem:[#allocation2 + $0x8] sm:$0x3f]  ;;  %vm151_vm1 = vcmask 1041408  }
   0xb   :  { %93 = vst [vmem:[#allocation1] ss:$4 sm:$0xff] %v62_v1  ;;  %v64_v4 = vld [vmem:[#allocation4] sm:$0xff]  ;;  %v65_v5 = vld [vmem:[#allocation4 + $0x8] sm:$0x3f]  ;;  %vm58_vm2 = vcmask 1024  }
   0xc   :  { %95 = vst [vmem:[#allocation1 + $0x20] ss:$4 sm:$0xff] %v63_v2  ;;  %v69_v3 = vand.u32 127, %v68_v0  ;;  %v291_v19 = vmov 0.0  }
   0xd   :  { %59 = vst.msk [vmem:[%s381_s2] sm:$0x3] %vm58_vm2, %v291_v19 }
   0xe   :  { %v75_v6 = vadd.s32 768, %v69_v3  ;;  %60 = vst.msk [vmem:[%s382_s3] sm:$0x3] %vm58_vm2, %v291_v19 }
   0xf   :  { %61 = vst.msk [vmem:[%s383_s4] sm:$0x3] %vm58_vm2, %v291_v19 }
  0x10   :  { %vm90_vm0 = vcmp.lt.s32.totalorder %v75_v6, 800 }
  0x12   :  { %v96_v7 = vld.sshfl [vmem:[#allocation1] sm:$0xff pattern:$0x73625140]  ;;  %v97_v8 = vld.sshfl [vmem:[#allocation1 + $0x8] sm:$0xff pattern:$0x73625140] }
  0x13   :  { %v98_v9 = vld.sshfl [vmem:[#allocation1 + $0x10] sm:$0xff pattern:$0x73625140]  ;;  %v99_v10 = vld.sshfl [vmem:[#allocation1 + $0x18] sm:$0xff pattern:$0x73625140]  ;;  %v171_v14 = vmul.f32 %v96_v7, %v96_v7  ;;  %v172_v15 = vmul.f32 %v97_v8, %v97_v8 }
  0x14   :  { %v100_v11 = vld.sshfl [vmem:[#allocation1 + $0x20] sm:$0xff pattern:$0x73625140]  ;;  %v101_v12 = vld.sshfl [vmem:[#allocation1 + $0x28] sm:$0xff pattern:$0x73625140]  ;;  %v173_v16 = vmul.f32 %v98_v9, %v98_v9  ;;  %v174_v29 = vmul.f32 %v99_v10, %v99_v10 }
  0x15   :  { %v102_v13 = vld.sshfl [vmem:[#allocation1 + $0x30] sm:$0xff pattern:$0x73625140]  ;;  %119 = vst [vmem:[#allocation1] ss:$4 sm:$0xff] %v64_v4  ;;  %v178_v17 = vsel %vm151_vm1, %v171_v14, 0.0  ;;  %v175_v30 = vmul.f32 %v100_v11, %v100_v11  ;;  %v176_v59 = vmul.f32 %v101_v12, %v101_v12 }
  0x16   :  { %121 = vst [vmem:[#allocation1 + $0x20] ss:$4 sm:$0xff] %v65_v5  ;;  %v179_v18 = vsel %vm151_vm1, %v172_v15, 0.0  ;;  %v116_v20 = vsel %vm90_vm0, %v102_v13, 0.0  ;;  %v181_v21 = vsel %vm151_vm1, %v173_v16, 0.0  ;;  %v183_v49 = vsel %vm151_vm1, %v174_v29, 0.0 }
  0x17   :  { %v180_v24 = vadd.f32 %v179_v18, %v178_v17  ;;  %v185_v0 = vsel %vm151_vm1, %v175_v30, 0.0 }
  0x19   :  { %v182_v45 = vadd.f32 %v181_v21, %v180_v24  ;;  %v143_v21 = vld [vmem:[%s381_s2] sm:$0x3] }
  0x1b   :  { %v184_v60 = vadd.f32 %v183_v49, %v182_v45 }
  0x1c   :  { %v122_v22 = vld.sshfl [vmem:[#allocation1] sm:$0xff pattern:$0x73625140]  ;;  %v123_v23 = vld.sshfl [vmem:[#allocation1 + $0x8] sm:$0xff pattern:$0x73625140] }
  0x1d   :  { %v124_v25 = vld.sshfl [vmem:[#allocation1 + $0x10] sm:$0xff pattern:$0x73625140]  ;;  %v125_v26 = vld.sshfl [vmem:[#allocation1 + $0x18] sm:$0xff pattern:$0x73625140]  ;;  %v144_v27 = vmul.f32 %v122_v22, %v96_v7  ;;  %v145_v28 = vmul.f32 %v123_v23, %v97_v8  ;;  %v196_v35 = vmul.f32 %v122_v22, %v122_v22  ;;  %v197_v36 = vmul.f32 %v123_v23, %v123_v23 }
  0x1e   :  { %v126_v31 = vld.sshfl [vmem:[#allocation1 + $0x20] sm:$0xff pattern:$0x73625140]  ;;  %v127_v32 = vld.sshfl [vmem:[#allocation1 + $0x28] sm:$0xff pattern:$0x73625140]  ;;  %v146_v33 = vmul.f32 %v124_v25, %v98_v9  ;;  %v147_v34 = vmul.f32 %v125_v26, %v99_v10  ;;  %v198_v41 = vmul.f32 %v124_v25, %v124_v25  ;;  %v199_v48 = vmul.f32 %v125_v26, %v125_v26 }
  0x1f   :  { %v128_v37 = vld.sshfl [vmem:[#allocation1 + $0x30] sm:$0xff pattern:$0x73625140]  ;;  %v148_v38 = vmul.f32 %v126_v31, %v100_v11  ;;  %v152_v39 = vsel %vm151_vm1, %v144_v27, 0.0  ;;  %v153_v40 = vsel %vm151_vm1, %v145_v28, 0.0  ;;  %v149_v46 = vmul.f32 %v127_v32, %v101_v12 }
  0x20   :  { %v142_v42 = vsel %vm90_vm0, %v128_v37, 0.0  ;;  %v154_v43 = vadd.f32 %v153_v40, %v152_v39  ;;  %v155_v44 = vsel %vm151_vm1, %v146_v33, 0.0  ;;  %v157_v47 = vsel %vm151_vm1, %v147_v34, 0.0  ;;  %v195_v23 = vld [vmem:[%s383_s4] sm:$0x3] }
  0x21   :  { %v150_v50 = vmul.f32 %v142_v42, %v116_v20  ;;  %v203_v52 = vsel %vm151_vm1, %v196_v35, 0.0  ;;  %v159_v53 = vsel %vm151_vm1, %v148_v38, 0.0  ;;  %v200_v54 = vmul.f32 %v126_v31, %v126_v31  ;;  %v170_v26 = vld [vmem:[%s382_s3] sm:$0x3] }
  0x22   :  { %v156_v51 = vadd.f32 %v155_v44, %v154_v43  ;;  %v204_v55 = vsel %vm151_vm1, %v197_v36, 0.0  ;;  %v206_v56 = vsel %vm151_vm1, %v198_v41, 0.0  ;;  %v161_v61 = vsel %vm151_vm1, %v149_v46, 0.0 }
  0x23   :  { %v205_v58 = vadd.f32 %v204_v55, %v203_v52  ;;  %v201_v62 = vmul.f32 %v127_v32, %v127_v32  ;;  %v208_v63 = vsel %vm151_vm1, %v199_v48, 0.0  ;;  %v163_v3 = vsel %vm151_vm1, %v150_v50, 0.0 }
  0x24   :  { %v158_v57 = vadd.f32 %v157_v47, %v156_v51  ;;  %v202_v4 = vmul.f32 %v142_v42, %v142_v42  ;;  %v210_v5 = vsel %vm151_vm1, %v200_v54, 0.0  ;;  %v186_v8 = vadd.f32 %v185_v0, %v184_v60 }
  0x25   :  { %v207_v2 = vadd.f32 %v206_v56, %v205_v58  ;;  %v212_v9 = vsel %vm151_vm1, %v201_v62, 0.0  ;;  %v177_v10 = vmul.f32 %v116_v20, %v116_v20  ;;  %v187_v11 = vsel %vm151_vm1, %v176_v59, 0.0 }
  0x26   :  { %v160_v1 = vadd.f32 %v159_v53, %v158_v57  ;;  %v214_v14 = vsel %vm151_vm1, %v202_v4, 0.0  ;;  %v188_v16 = vadd.f32 %v187_v11, %v186_v8 }
  0x27   :  { %v209_v7 = vadd.f32 %v208_v63, %v207_v2  ;;  %v189_v17 = vsel %vm151_vm1, %v177_v10, 0.0 }
  0x28   :  { %v162_v6 = vadd.f32 %v161_v61, %v160_v1  ;;  %v190_v19 = vadd.f32 %v189_v17, %v188_v16 }
  0x29   :  { %v211_v13 = vadd.f32 %v210_v5, %v209_v7 }
  0x2a   :  { %v164_v12 = vadd.f32 %v163_v3, %v162_v6 }
  0x2b   :  { %v213_v15 = vadd.f32 %v212_v9, %v211_v13 }
  0x2c   :  { %165 = vadd.xlane.f32.xlu0 %v164_v12 }
  0x2d   :  { %v215_v18 = vadd.f32 %v214_v14, %v213_v15 }
  0x2f   :  { %216 = vadd.xlane.f32.xlu1 %v215_v18 }
  0x34   :  { %191 = vadd.xlane.f32.xlu0 %v190_v19 }
  0x9f   :  { %v166_v20 = vpop.xlane.xlu0 %165 }
  0xa0   :  { %v167_v22 = vadd.f32 %v166_v20, %v143_v21 }
  0xa2   :  { %169 = vst.msk [vmem:[%s381_s2] sm:$0x3] %vm58_vm2, %v167_v22  ;;  %v217_v24 = vpop.xlane.xlu1 %216 }
  0xa3   :  { %v218_v25 = vadd.f32 %v217_v24, %v195_v23 }
  0xa5   :  { %219 = vst.msk [vmem:[%s383_s4] sm:$0x3] %vm58_vm2, %v218_v25 }
  0xa7   :  { %v192_v27 = vpop.xlane.xlu0 %191 }
  0xa8   :  { %v193_v28 = vadd.f32 %v192_v27, %v170_v26 }
  0xaa   :  { %194 = vst.msk [vmem:[%s382_s3] sm:$0x3] %vm58_vm2, %v193_v28 }
  0xab   :  { %232 = vsyncpa [#allocation3], 1 }
  0xac   :  { %233 = vsyncpa [#allocation5], 1 }

</bundles_post_ra>
